<compile_context>
chip_gen: v7x
topology: tpu7x:2x2x1
jax: 0.10.0
libtpu: 0.0.40
codegen_flags: <defaults>
</compile_context>

<pallas_src>
import contextlib
import functools

import jax
import jax.numpy as jnp
import numpy as np
from jax import lax
from jax.experimental import pallas as pl
from jax.experimental.pallas import tpu as pltpu


# ----------------------------- budgeting helpers ----------------------------
@functools.lru_cache(maxsize=None)
def _vmem_limit_bytes():
    """~72% of physical per-core VMEM (v5e/v6e: 128 MiB -> ~92 MiB, v7x: 64 MiB ->
    ~46 MiB). Falls back to a conservative 46 MiB if the query is unavailable."""
    try:
        cap = int(pltpu.get_tpu_info().vmem_capacity_bytes)
    except Exception:
        cap = 64 * 1024 * 1024
    return int(cap * 0.72)


@functools.lru_cache(maxsize=None)
def _single_buffer_supported():
    """True if pl.BlockSpec(..., pipeline_mode=pl.Buffered(1)) is accepted, i.e. the
    constant-index weight block can be held single-buffered (halves weight VMEM)."""
    def _probe(x_ref, o_ref):
        o_ref[...] = x_ref[...]
    try:
        out = pl.pallas_call(
            _probe,
            out_shape=jax.ShapeDtypeStruct((8, 128), jnp.float32),
            grid=(1,),
            in_specs=[pl.BlockSpec((8, 128), lambda i: (0, 0),
                                   pipeline_mode=pl.Buffered(1))],
            out_specs=pl.BlockSpec((8, 128), lambda i: (0, 0)),
        )(jnp.zeros((8, 128), jnp.float32))
        jax.block_until_ready(out)
        return True
    except Exception:
        return False


def _choose_tile(T, max_tile=512):
    """Return (T_padded, tile): tile divides T_padded; prefers 256- then 128-aligned
    tiles (MXU-friendly); pads T up to the next multiple of 128 when no aligned
    divisor exists (e.g. Whisper encoder T=1500 -> 1536 with a 512-wide tile)."""
    if T <= max_tile:
        return T, T
    for align in (256, 128):
        for t in range((max_tile // align) * align, align - 1, -align):
            if T % t == 0:
                return T, t
    T_pad = ((T + 127) // 128) * 128
    for t in range((max_tile // 128) * 128, 127, -128):
        if T_pad % t == 0:
            return T_pad, t
    return T_pad, 128


def _heads_per_block(n_head, head_dim):
    """Heads per attention grid step so the sliced feature width is 128-lane dense
    (or the full feature dim, which always satisfies the (8,128) block constraint)."""
    if head_dim % 128 == 0:
        return 1
    if 128 % head_dim == 0:
        hb = 128 // head_dim
        if n_head % hb == 0:
            return hb
    return n_head


# ----------------------------- Pallas kernels ------------------------------
def _split_linear_kernel(x_ref, w_ref, b_ref, *o_refs, split_cols):
    # x_ref: (1, Tt, Cin)   w_ref: (Cin, Cout_total)   b_ref: (1, Cout_total)
    # o_refs: n_split outputs of (1, Tt, split_cols).
    # One matmul per lane-aligned column slice of W; store immediately so the live
    # f32 intermediate is (Tt, split_cols) instead of (Tt, Cout_total).
    x = x_ref[0]
    for i, o_ref in enumerate(o_refs):
        lo = i * split_cols
        y = jnp.dot(x, w_ref[:, lo:lo + split_cols],
                    preferred_element_type=jnp.float32) + b_ref[:, lo:lo + split_cols]
        o_ref[0] = y.astype(o_ref.dtype)


def _attention_kernel(*refs, heads_per_blk, head_dim, has_mask, return_qk):
    # refs: q, k, v, [mask], [qk], wv
    it = iter(refs)
    q_ref = next(it)                               # (1, Tqt, Hb*D)  (scale pre-folded)
    k_ref = next(it)                               # (1, Tk,  Hb*D)  (scale pre-folded)
    v_ref = next(it)                               # (1, Tk,  Hb*D)
    mask_ref = next(it) if has_mask else None      # (Tqt, Tk) f32 additive mask
    qk_ref = next(it) if return_qk else None       # (1, Hb, Tqt, Tk) f32
    wv_ref = next(it)                              # (1, Tqt, Hb*D)

    q = q_ref[0]
    k = k_ref[0]
    v = v_ref[0]
    mask = mask_ref[...] if has_mask else None     # hoisted: loaded once per block

    # TODO(synk): the per-head loop could become one batched lax.dot_general, but the
    # batch dim is not leading here; keeping Tqt large (<=512) amortizes the narrow
    # head_dim on the 256x256 MXUs instead.
    parts = []
    for h in range(heads_per_blk):
        lo = h * head_dim
        qh = q[:, lo:lo + head_dim]
        kh = k[:, lo:lo + head_dim]
        vh = v[:, lo:lo + head_dim]
        # q @ k^T via explicit contracting dims (no materialized transpose).
        scores = lax.dot_general(qh, kh, (((1,), (1,)), ((), ())),
                                 preferred_element_type=jnp.float32)
        if has_mask:
            scores = scores + mask
        if return_qk:
            qk_ref[0, h] = scores
        m = jnp.max(scores, axis=-1, keepdims=True)
        e = jnp.exp(scores - m)
        inv = pl.reciprocal(jnp.sum(e, axis=-1, keepdims=True), approx=True)  # EUP slot
        w = (e * inv).astype(vh.dtype)
        parts.append(jnp.dot(w, vh, preferred_element_type=jnp.float32))
    # single lane-dense store for all heads of this group
    wv_ref[0] = jnp.concatenate(parts, axis=-1).astype(wv_ref.dtype)


# ----------------------------- wrappers ------------------------------------
def fused_linear(x, w_t, b, n_split=1):
    """y = x @ w_t + b, optionally split column-wise into n_split separate outputs.
    x: (B, T, Cin); w_t: (Cin, Cout_total) already in matmul layout; b: (Cout_total,)."""
    B, T, Cin = x.shape
    Cout_total = w_t.shape[1]
    split_cols = Cout_total // n_split

    T_pad, Tt = _choose_tile(T)
    if T_pad != T:
        x = jnp.pad(x, ((0, 0), (0, T_pad - T), (0, 0)))
    grid = (B, T_pad // Tt)

    # Constant index_map -> one resident copy of W/b is enough; avoid double-buffering.
    w_kwargs = ({"pipeline_mode": pl.Buffered(1)}
                if _single_buffer_supported() else {})

    kern = functools.partial(_split_linear_kernel, split_cols=split_cols)
    out_shape = tuple(jax.ShapeDtypeStruct((B, T_pad, split_cols), x.dtype)
                      for _ in range(n_split))
    out_specs = tuple(pl.BlockSpec((1, Tt, split_cols), lambda bb, tt: (bb, tt, 0))
                      for _ in range(n_split))
    outs = pl.pallas_call(
        kern,
        out_shape=out_shape,
        grid=grid,
        in_specs=[
            pl.BlockSpec((1, Tt, Cin), lambda bb, tt: (bb, tt, 0)),
            pl.BlockSpec((Cin, Cout_total), lambda bb, tt: (0, 0), **w_kwargs),
            pl.BlockSpec((1, Cout_total), lambda bb, tt: (0, 0), **w_kwargs),
        ],
        out_specs=out_specs,
        compiler_params=pltpu.CompilerParams(
            dimension_semantics=("parallel", "parallel"),
            vmem_limit_bytes=_vmem_limit_bytes()),
    )(x, w_t, b.reshape(1, Cout_total))
    if T_pad != T:
        outs = tuple(o[:, :T] for o in outs)
    return outs if n_split > 1 else outs[0]


def qkv_attention(q, k, v, n_head, mask=None, return_qk=True):
    """q: (B, Tq, C) pre-scaled, k: (B, Tk, C) pre-scaled, v: (B, Tk, C).
    Returns (wv: (B, Tq, C), qk: (B, n_head, Tq, Tk) float32 or None)."""
    B, Tq, C = q.shape
    Tk = k.shape[1]
    D = C // n_head
    Hb = _heads_per_block(n_head, D)
    HbD = Hb * D
    n_hgrp = n_head // Hb

    # Pad the query axis to 128/256-aligned tiles and Tk to a multiple of 128 so
    # QK^T / qk stores are lane-dense (review fix for the T=1500 encoder fallback).
    Tq_pad, Tqt = _choose_tile(Tq)
    Tk_pad = Tk if (Tk <= 128 or Tk % 128 == 0) else ((Tk + 127) // 128) * 128
    if Tq_pad != Tq:
        q = jnp.pad(q, ((0, 0), (0, Tq_pad - Tq), (0, 0)))
    if Tk_pad != Tk:
        k = jnp.pad(k, ((0, 0), (0, Tk_pad - Tk), (0, 0)))
        v = jnp.pad(v, ((0, 0), (0, Tk_pad - Tk), (0, 0)))

    # Additive mask combining the (optional) user mask and the key-padding mask.
    # NOTE: the PyTorch module slices mask[:n_ctx, :n_ctx]; a mask only makes sense
    # for self-attention (Tq == Tk) where this is identical to mask[:Tq, :Tk].
    add_mask = None
    if mask is not None:
        add_mask = mask[:Tq, :Tk].astype(jnp.float32)
    if Tk_pad != Tk or (Tq_pad != Tq and add_mask is not None):
        full = jnp.zeros((Tq_pad, Tk_pad), jnp.float32)
        if add_mask is not None:
            full = full.at[:Tq, :Tk].set(add_mask)
        if Tk_pad != Tk:
            full = full.at[:, Tk:].set(-jnp.inf)   # padded keys get zero softmax weight
        add_mask = full
    has_mask = add_mask is not None

    grid = (B, n_hgrp, Tq_pad // Tqt)   # batch/head-group outer (v7x megacore split)
    kern = functools.partial(_attention_kernel, heads_per_blk=Hb, head_dim=D,
                             has_mask=has_mask, return_qk=return_qk)

    in_specs = [
        pl.BlockSpec((1, Tqt, HbD), lambda bb, hg, tq: (bb, tq, hg)),
        pl.BlockSpec((1, Tk_pad, HbD), lambda bb, hg, tq: (bb, 0, hg)),
        pl.BlockSpec((1, Tk_pad, HbD), lambda bb, hg, tq: (bb, 0, hg)),
    ]
    args = [q, k, v]
    if has_mask:
        in_specs.append(pl.BlockSpec((Tqt, Tk_pad), lambda bb, hg, tq: (tq, 0)))
        args.append(add_mask)

    wv_shape = jax.ShapeDtypeStruct((B, Tq_pad, C), q.dtype)
    wv_spec = pl.BlockSpec((1, Tqt, HbD), lambda bb, hg, tq: (bb, tq, hg))
    if return_qk:
        # TODO(synk): qk could be emitted in bf16 to halve the writeback bandwidth;
        # kept f32 to match the module's `qk.float()` semantics.
        out_shape = (jax.ShapeDtypeStruct((B, n_head, Tq_pad, Tk_pad), jnp.float32),
                     wv_shape)
        out_specs = (pl.BlockSpec((1, Hb, Tqt, Tk_pad),
                                  lambda bb, hg, tq: (bb, hg, tq, 0)),
                     wv_spec)
    else:
        out_shape = wv_shape
        out_specs = wv_spec

    outs = pl.pallas_call(
        kern,
        out_shape=out_shape,
        grid=grid,
        in_specs=in_specs,
        out_specs=out_specs,
        compiler_params=pltpu.CompilerParams(
            dimension_semantics=("parallel", "parallel", "parallel"),
            vmem_limit_bytes=_vmem_limit_bytes()),
    )(*args)

    if return_qk:
        qk, wv = outs
    else:
        qk, wv = None, outs
    if Tq_pad != Tq:
        wv = wv[:, :Tq]
    if qk is not None and (Tq_pad != Tq or Tk_pad != Tk):
        qk = qk[:, :, :Tq, :Tk]
    return wv, qk


def prepare_mha_params(params, n_head, dtype=jnp.float32):
    """One-time weight prep hoisted out of the forward: transpose to matmul layout,
    fold the D**-0.25 attention scale into Q/K (+ q bias), build the fused QKV / KV
    operands, and cast. Avoids re-materializing ~20 MiB of weights in HBM per call."""
    C = params["q_w"].shape[0]
    D = C // n_head
    scale = float(D ** (-0.25))
    zeros_c = jnp.zeros((C,), dtype)
    q_w_t = (params["q_w"].T * scale).astype(dtype)
    k_w_t = (params["k_w"].T * scale).astype(dtype)
    v_w_t = params["v_w"].T.astype(dtype)
    q_b = (params["q_b"] * scale).astype(dtype)
    v_b = params["v_b"].astype(dtype)
    return {
        # self-attention: single fused QKV matmul operand (key Linear has no bias)
        "w_qkv": jnp.concatenate([q_w_t, k_w_t, v_w_t], axis=1),
        "b_qkv": jnp.concatenate([q_b, zeros_c, v_b], axis=0),
        # cross-attention: q from x, fused K/V from xa
        "w_q": q_w_t, "b_q": q_b,
        "w_kv": jnp.concatenate([k_w_t, v_w_t], axis=1),
        "b_kv": jnp.concatenate([zeros_c, v_b], axis=0),
        "w_o": params["o_w"].T.astype(dtype),
        "b_o": params["o_b"].astype(dtype),
    }


def multi_head_attention(params, x, n_head, xa=None, mask=None, return_qk=True):
    """Mirrors MultiHeadAttention.forward. `params` may be raw PyTorch-layout weights
    or (preferably) the output of prepare_mha_params (hoisted weight prep)."""
    # TODO(synk): kv_cache dict keyed by nn.Module objects has no JAX analogue;
    # only the cache-miss (fresh K/V projection) path is implemented.
    if "w_qkv" not in params:
        params = prepare_mha_params(params, n_head, x.dtype)

    if xa is None:
        q, k, v = fused_linear(x, params["w_qkv"], params["b_qkv"], n_split=3)
    else:
        q = fused_linear(x, params["w_q"], params["b_q"], n_split=1)
        k, v = fused_linear(xa, params["w_kv"], params["b_kv"], n_split=2)

    wv, qk = qkv_attention(q, k, v, n_head, mask=mask, return_qk=return_qk)
    # TODO(synk): for decode, the output projection could be fused into the attention
    # kernel (head-group axis 'arbitrary' + f32 accumulator) to kill the wv HBM round
    # trip; kept as a separate lane-dense linear here.
    out = fused_linear(wv, params["w_o"], params["b_o"])
    return out, qk


# ----------------------------- reference (pure JAX) ------------------------
def _reference(params, x, n_head, xa=None, mask=None, matmul_precision=None):
    ctx = (jax.default_matmul_precision(matmul_precision)
           if matmul_precision else contextlib.nullcontext())
    with ctx:
        kv = x if xa is None else xa
        B, T, C = x.shape
        S = kv.shape[1]
        D = C // n_head
        scale = D ** (-0.25)
        q = x @ params["q_w"].T + params["q_b"]
        k = kv @ params["k_w"].T
        v = kv @ params["v_w"].T + params["v_b"]
        qh = q.reshape(B, T, n_head, D).transpose(0, 2, 1, 3) * scale
        kh = k.reshape(B, S, n_head, D).transpose(0, 2, 3, 1) * scale
        vh = v.reshape(B, S, n_head, D).transpose(0, 2, 1, 3)
        qk = jnp.einsum("bhtd,bhds->bhts", qh, kh)
        if mask is not None:
            qk = qk + mask[:T, :T]
        qk = qk.astype(jnp.float32)
        w = jax.nn.softmax(qk, axis=-1).astype(x.dtype)
        wv = jnp.einsum("bhts,bhsd->bhtd", w, vh).transpose(0, 2, 1, 3).reshape(B, T, C)
        return wv @ params["o_w"].T + params["o_b"], qk


def _check(out, qk, refs, out_tol=1e-3, qk_tol=1e-4):
    """refs: list of (ref_out, ref_qk) at different matmul precisions; the kernel must
    match at least one (XLA's default f32 matmul precision on the MXU may differ from
    Mosaic's, so we accept either the full-f32 or the backend-default reference)."""
    errs = []
    for ref_out, ref_qk in refs:
        try:
            np.testing.assert_allclose(np.asarray(out), np.asarray(ref_out),
                                       rtol=out_tol, atol=out_tol)
            if qk is not None:
                rq = np.asarray(ref_qk)
                kq = np.asarray(qk)
                fin = np.isfinite(rq)
                np.testing.assert_allclose(kq[fin], rq[fin], rtol=qk_tol, atol=qk_tol)
                assert np.all(kq[~fin] == -np.inf)
            return
        except AssertionError as e:  # try the next reference precision
            errs.append(e)
    raise errs[0]


# ----------------------------- main -----------------------------------------
if __name__ == "__main__":
    n_state, n_head, batch, n_ctx, n_xa = 32, 4, 2, 8, 16

    key = jax.random.PRNGKey(0)
    ks = jax.random.split(key, 10)
    init = lambda k, shape: jax.random.normal(k, shape, jnp.float32) * 0.1

    params = {
        "q_w": init(ks[0], (n_state, n_state)),
        "q_b": init(ks[1], (n_state,)),
        "k_w": init(ks[2], (n_state, n_state)),   # key projection: no bias
        "v_w": init(ks[3], (n_state, n_state)),
        "v_b": init(ks[4], (n_state,)),
        "o_w": init(ks[5], (n_state, n_state)),
        "o_b": init(ks[6], (n_state,)),
    }
    prep = prepare_mha_params(params, n_head, jnp.float32)  # hoisted weight prep

    x = jax.random.normal(ks[7], (batch, n_ctx, n_state), jnp.float32)
    xa = jax.random.normal(ks[8], (batch, n_xa, n_state), jnp.float32)
    # causal mask like the Whisper decoder (strictly-upper-triangular -inf)
    mask = jnp.triu(jnp.full((n_ctx, n_ctx), -jnp.inf, jnp.float32), k=1)

    def refs_for(x_, mask_=None, xa_=None):
        return [_reference(params, x_, n_head, xa=xa_, mask=mask_,
                           matmul_precision="float32"),
                _reference(params, x_, n_head, xa=xa_, mask=mask_)]

    # 1) masked self-attention (decoder path)
    out, qk = multi_head_attention(prep, x, n_head, mask=mask)
    jax.block_until_ready(out)
    jax.block_until_ready(qk)
    refs1 = refs_for(x, mask_=mask)
    _check(out, qk, refs1)

    # 2) unmasked self-attention (encoder path; exercises the mask-free kernel)
    out2, qk2 = multi_head_attention(prep, x, n_head)
    _check(jax.block_until_ready(out2), qk2, refs_for(x))

    # 3) qk writeback skipped entirely (return_qk=False)
    out3, qk3 = multi_head_attention(prep, x, n_head, mask=mask, return_qk=False)
    assert qk3 is None
    _check(jax.block_until_ready(out3), None, refs1)

    # 4) cross-attention (q from x, fused K/V from xa)
    out4, qk4 = multi_head_attention(prep, x, n_head, xa=xa)
    _check(jax.block_until_ready(out4), qk4, refs_for(x, xa_=xa))

    # 5) key-padding path: T=136 (>128, not a multiple of 128) exercises the
    #    pad-to-128 tiling and the generated -inf key-padding mask.
    x5 = jax.random.normal(ks[9], (batch, 136, n_state), jnp.float32)
    out5, qk5 = multi_head_attention(prep, x5, n_head)
    _check(jax.block_until_ready(out5), qk5, refs_for(x5))

    print("KERNEL_OK")
</pallas_src>

<mosaic_0001>
module attributes {stable_mosaic.version = 11 : i64} {
  func.func @_probe(%arg0: i32, %arg1: memref<8x128xf32, #tpu.memory_space<vmem>>, %arg2: memref<8x128xf32, #tpu.memory_space<vmem>>) attributes {dimension_semantics = [#tpu.dimension_semantics<arbitrary>], iteration_bounds = array<i64: 1>, scalar_prefetch = 0 : i64, scratch_operands = 0 : i64, tpu.core_type = #tpu.core_type<tc>, window_params = [{pipeline_mode = #tpu.pipeline_mode<synchronous>, transform_indices = @transform_0, window_bounds = array<i64: 8, 128>}, {pipeline_mode = #tpu.pipeline_mode<synchronous>, transform_indices = @transform_1, window_bounds = array<i64: 8, 128>}]} {
    %c0 = arith.constant 0 : index
    %c0_0 = arith.constant 0 : index
    %0 = vector.load %arg1[%c0, %c0_0] : memref<8x128xf32, #tpu.memory_space<vmem>>, vector<8x128xf32>
    %c0_1 = arith.constant 0 : index
    %c0_2 = arith.constant 0 : index
    %1 = vector.load %arg2[%c0_1, %c0_2] : memref<8x128xf32, #tpu.memory_space<vmem>>, vector<8x128xf32>
    tpu.vector_store %arg2[%c0_1, %c0_2], %0 {strides = array<i32>} : memref<8x128xf32, #tpu.memory_space<vmem>>, vector<8x128xf32>,
    return
  }
  func.func @transform_0(%arg0: i32) -> (i32, i32) {
    %c0_i32 = arith.constant 0 : i32
    %c0_i32_0 = arith.constant 0 : i32
    %c0_i32_1 = arith.constant 0 : i32
    return %c0_i32, %c0_i32_0 : i32, i32
  }
  func.func @transform_1(%arg0: i32) -> (i32, i32) {
    %c0_i32 = arith.constant 0 : i32
    %c0_i32_0 = arith.constant 0 : i32
    %c0_i32_1 = arith.constant 0 : i32
    return %c0_i32, %c0_i32_0 : i32, i32
  }
}

module attributes {stable_mosaic.version = 11 : i64} {
  func.func @_split_linear_kernel(%arg0: i32, %arg1: i32, %arg2: memref<1x8x32xf32, #tpu.memory_space<vmem>>, %arg3: memref<32x96xf32, #tpu.memory_space<vmem>>, %arg4: memref<1x96xf32, #tpu.memory_space<vmem>>, %arg5: memref<1x8x32xf32, #tpu.memory_space<vmem>>, %arg6: memref<1x8x32xf32, #tpu.memory_space<vmem>>, %arg7: memref<1x8x32xf32, #tpu.memory_space<vmem>>) attributes {dimension_semantics = [#tpu.dimension_semantics<parallel>, #tpu.dimension_semantics<parallel>], iteration_bounds = array<i64: 2, 1>, scalar_prefetch = 0 : i64, scratch_operands = 0 : i64, tpu.core_type = #tpu.core_type<tc>, window_params = [{transform_indices = @transform_0, window_bounds = array<i64: 1, 8, 32>}, {pipeline_mode = #tpu.pipeline_mode<synchronous>, transform_indices = @transform_1, window_bounds = array<i64: 32, 96>}, {pipeline_mode = #tpu.pipeline_mode<synchronous>, transform_indices = @transform_2, window_bounds = array<i64: 1, 96>}, {transform_indices = @transform_3, window_bounds = array<i64: 1, 8, 32>}, {transform_indices = @transform_4, window_bounds = array<i64: 1, 8, 32>}, {transform_indices = @transform_5, window_bounds = array<i64: 1, 8, 32>}]} {
    %c0 = arith.constant 0 : index
    %c0_0 = arith.constant 0 : index
    %c0_1 = arith.constant 0 : index
    %0 = vector.load %arg2[%c0, %c0_0, %c0_1] : memref<1x8x32xf32, #tpu.memory_space<vmem>>, vector<1x8x32xf32>
    %1 = vector.shape_cast %0 : vector<1x8x32xf32> to vector<8x32xf32>
    %c0_2 = arith.constant 0 : index
    %c0_3 = arith.constant 0 : index
    %2 = vector.load %arg3[%c0_2, %c0_3] : memref<32x96xf32, #tpu.memory_space<vmem>>, vector<32x32xf32>
    %cst = arith.constant dense<0.000000e+00> : vector<8x32xf32>
    %3 = tpu.matmul %1, %2, %cst {dimension_numbers = #tpu.dot_dimension_numbers<[1], [0], [0], [1], [0, 0, 1, 1], [], []>} : vector<8x32xf32>, vector<32x32xf32>, vector<8x32xf32> -> vector<8x32xf32>
    %c0_4 = arith.constant 0 : index
    %c0_5 = arith.constant 0 : index
    %4 = vector.load %arg4[%c0_4, %c0_5] : memref<1x96xf32, #tpu.memory_space<vmem>>, vector<1x32xf32>
    %5 = vector.broadcast %4 : vector<1x32xf32> to vector<8x32xf32>
    %6 = arith.addf %3, %5 : vector<8x32xf32>
    %c0_6 = arith.constant 0 : index
    %c0_7 = arith.constant 0 : index
    %c0_8 = arith.constant 0 : index
    %7 = vector.load %arg5[%c0_6, %c0_7, %c0_8] : memref<1x8x32xf32, #tpu.memory_space<vmem>>, vector<1x8x32xf32>
    %8 = vector.shape_cast %7 : vector<1x8x32xf32> to vector<8x32xf32>
    %9 = vector.shape_cast %6 : vector<8x32xf32> to vector<1x8x32xf32>
    tpu.vector_store %arg5[%c0_6, %c0_7, %c0_8], %9 {strides = array<i32>} : memref<1x8x32xf32, #tpu.memory_space<vmem>>, vector<1x8x32xf32>,
    %c0_9 = arith.constant 0 : index
    %c32 = arith.constant 32 : index
    %10 = vector.load %arg3[%c0_9, %c32] : memref<32x96xf32, #tpu.memory_space<vmem>>, vector<32x32xf32>
    %cst_10 = arith.constant dense<0.000000e+00> : vector<8x32xf32>
    %11 = tpu.matmul %1, %10, %cst_10 {dimension_numbers = #tpu.dot_dimension_numbers<[1], [0], [0], [1], [0, 0, 1, 1], [], []>} : vector<8x32xf32>, vector<32x32xf32>, vector<8x32xf32> -> vector<8x32xf32>
    %c0_11 = arith.constant 0 : index
    %c32_12 = arith.constant 32 : index
    %12 = vector.load %arg4[%c0_11, %c32_12] : memref<1x96xf32, #tpu.memory_space<vmem>>, vector<1x32xf32>
    %13 = vector.broadcast %12 : vector<1x32xf32> to vector<8x32xf32>
    %14 = arith.addf %11, %13 : vector<8x32xf32>
    %c0_13 = arith.constant 0 : index
    %c0_14 = arith.constant 0 : index
    %c0_15 = arith.constant 0 : index
    %15 = vector.load %arg6[%c0_13, %c0_14, %c0_15] : memref<1x8x32xf32, #tpu.memory_space<vmem>>, vector<1x8x32xf32>
    %16 = vector.shape_cast %15 : vector<1x8x32xf32> to vector<8x32xf32>
    %17 = vector.shape_cast %14 : vector<8x32xf32> to vector<1x8x32xf32>
    tpu.vector_store %arg6[%c0_13, %c0_14, %c0_15], %17 {strides = array<i32>} : memref<1x8x32xf32, #tpu.memory_space<vmem>>, vector<1x8x32xf32>,
    %c0_16 = arith.constant 0 : index
    %c64 = arith.constant 64 : index
    %18 = vector.load %arg3[%c0_16, %c64] : memref<32x96xf32, #tpu.memory_space<vmem>>, vector<32x32xf32>
    %cst_17 = arith.constant dense<0.000000e+00> : vector<8x32xf32>
    %19 = tpu.matmul %1, %18, %cst_17 {dimension_numbers = #tpu.dot_dimension_numbers<[1], [0], [0], [1], [0, 0, 1, 1], [], []>} : vector<8x32xf32>, vector<32x32xf32>, vector<8x32xf32> -> vector<8x32xf32>
    %c0_18 = arith.constant 0 : index
    %c64_19 = arith.constant 64 : index
    %20 = vector.load %arg4[%c0_18, %c64_19] : memref<1x96xf32, #tpu.memory_space<vmem>>, vector<1x32xf32>
    %21 = vector.broadcast %20 : vector<1x32xf32> to vector<8x32xf32>
    %22 = arith.addf %19, %21 : vector<8x32xf32>
    %c0_20 = arith.constant 0 : index
    %c0_21 = arith.constant 0 : index
    %c0_22 = arith.constant 0 : index
    %23 = vector.load %arg7[%c0_20, %c0_21, %c0_22] : memref<1x8x32xf32, #tpu.memory_space<vmem>>, vector<1x8x32xf32>
    %24 = vector.shape_cast %23 : vector<1x8x32xf32> to vector<8x32xf32>
    %25 = vector.shape_cast %22 : vector<8x32xf32> to vector<1x8x32xf32>
    tpu.vector_store %arg7[%c0_20, %c0_21, %c0_22], %25 {strides = array<i32>} : memref<1x8x32xf32, #tpu.memory_space<vmem>>, vector<1x8x32xf32>,
    return
  }
  func.func @transform_0(%arg0: i32, %arg1: i32) -> (i32, i32, i32) {
    %c0_i32 = arith.constant 0 : i32
    %c0_i32_0 = arith.constant 0 : i32
    return %arg0, %arg1, %c0_i32 : i32, i32, i32
  }
  func.func @transform_1(%arg0: i32, %arg1: i32) -> (i32, i32) {
    %c0_i32 = arith.constant 0 : i32
    %c0_i32_0 = arith.constant 0 : i32
    %c0_i32_1 = arith.constant 0 : i32
    return %c0_i32, %c0_i32_0 : i32, i32
  }
  func.func @transform_2(%arg0: i32, %arg1: i32) -> (i32, i32) {
    %c0_i32 = arith.constant 0 : i32
    %c0_i32_0 = arith.constant 0 : i32
    %c0_i32_1 = arith.constant 0 : i32
    return %c0_i32, %c0_i32_0 : i32, i32
  }
  func.func @transform_3(%arg0: i32, %arg1: i32) -> (i32, i32, i32) {
    %c0_i32 = arith.constant 0 : i32
    %c0_i32_0 = arith.constant 0 : i32
    return %arg0, %arg1, %c0_i32 : i32, i32, i32
  }
  func.func @transform_4(%arg0: i32, %arg1: i32) -> (i32, i32, i32) {
    %c0_i32 = arith.constant 0 : i32
    %c0_i32_0 = arith.constant 0 : i32
    return %arg0, %arg1, %c0_i32 : i32, i32, i32
  }
  func.func @transform_5(%arg0: i32, %arg1: i32) -> (i32, i32, i32) {
    %c0_i32 = arith.constant 0 : i32
    %c0_i32_0 = arith.constant 0 : i32
    return %arg0, %arg1, %c0_i32 : i32, i32, i32
  }
}

</mosaic_0001>

<bundles_post_ra>
// kernel: tpu_custom_call.1
= control target key start
LH: loop header
LB: loop body
LE: loop exit
PB: predicated region body
PF: predicated region fallthrough
CT: control target
= control target key end

     0   :  { %6 = vsyncpa [#allocation3], 0  ;;  %s124_s0 = inlined_call_operand.hbm [shape: f32[8,128], index: 0, kind: input, shape index: {}]   ;;  %s125_s1 = inlined_call_operand.hbm [shape: f32[8,128], index: 1, kind: output, shape index: {}]  }
   0x1   :  { %7 = vsyncpa [#allocation4], 0  ;;  %s88_s6 = smov [#allocation2]   ;;  %s40_s10 = scalar_lea.hbm %s124_s0, 128 }
   0x2   :  { %s14_s7 = sshll.u32 %s88_s6, 4  ;;  %p41_p0 = scmp.ne.s32.totalorder %s124_s0, %s40_s10  ;;  %s15_s7 = int_to_ptr.vmem [resolvable:$true] %s14_s7 }
   0x3   :  { %p44_p1 = scmp.lt.u32.totalorder %s40_s10, %s124_s0 }
   0x5   :  { %p46_p2 = pnand %p44_p1, %p41_p0 }
   0x7   :  { %49 = shalt.err (!%p46_p2)
}
   0x8   :  { %s50_s15 = scalar_lea.vmem %s15_s7, 128  ;;  %p55_p4 = scmp.lt.s32.totalorder %s15_s7, %s15_s7 }
   0x9   :  { %p51_p3 = scmp.ne.s32.totalorder %s15_s7, %s50_s15  ;;  %p56_p5 = scmp.lt.s32.totalorder %s50_s15, %s50_s15 }
   0xb   :  { %p57_p6 = por %p56_p5, %p55_p4 }
   0xd   :  { %p58_p7 = pnand %p57_p6, %p51_p3 }
   0xf   :  { %61 = shalt.err (!%p58_p7)
}
  0x10   :  { %17 = dma.hbm_to_vmem [thread:$0]  %s124_s0, 128, %s15_s7, [#allocation3]  }
  0x11   :  { %84 = dma.done.wait [#allocation3], 128  }
  0x12   :  { %85 = vsyncadd [#allocation3], 4294967168  ;;  %s89_s18 = smov [#allocation5]   ;;  %v21_v0 = vld [vmem:[#allocation2] sm:$0xff] }
  0x13   :  { %s29_s19 = sshll.u32 %s89_s18, 4  ;;  %22 = vst [vmem:[#allocation5] sm:$0xff] %v21_v0  ;;  %s30_s19 = int_to_ptr.vmem [resolvable:$true] %s29_s19 }
  0x14   :  { %s62_s20 = scalar_lea.vmem %s30_s19, 128  ;;  %p67_p9 = scmp.lt.s32.totalorder %s30_s19, %s30_s19 }
  0x15   :  { %p63_p8 = scmp.ne.s32.totalorder %s30_s19, %s62_s20  ;;  %p68_p10 = scmp.lt.s32.totalorder %s62_s20, %s62_s20 }
  0x17   :  { %p69_p11 = por %p68_p10, %p67_p9 }
  0x19   :  { %p70_p12 = pnand %p69_p11, %p63_p8 }
  0x1b   :  { %73 = shalt.err (!%p70_p12)
}
  0x1c   :  { %s74_s23 = scalar_lea.hbm %s125_s1, 128 }
  0x1d   :  { %p75_p13 = scmp.ne.s32.totalorder %s125_s1, %s74_s23  ;;  %p78_p0 = scmp.lt.u32.totalorder %s74_s23, %s125_s1 }
  0x1f   :  { %p80_p1 = pnand %p78_p0, %p75_p13 }
  0x21   :  { %83 = shalt.err (!%p80_p1)
}
  0x22   :  { %32 = dma.vmem_to_hbm [thread:$0]  %s30_s19, 128, %s125_s1, [#allocation4]  }
  0x23   :  { %86 = dma.done.wait [#allocation4], 128  }
  0x24   :  { %87 = vsyncadd [#allocation4], 4294967168 }
  0x25   :  { %36 = vsyncpa [#allocation3], 1 }
  0x26   :  { %37 = vsyncpa [#allocation4], 1 }

// kernel: tpu_custom_call.1
= control target key start
LH: loop header
LB: loop body
LE: loop exit
PB: predicated region body
PF: predicated region fallthrough
CT: control target
= control target key end

     0   :  { %11 = vsyncpa [#allocation3], 0  ;;  %s1537_s0 = inlined_call_operand.hbm [shape: f32[2,8,32], index: 0, kind: input, shape index: {}]   ;;  %s1538_s1 = inlined_call_operand.hbm [shape: f32[32,96], index: 1, kind: input, shape index: {}]   ;;  %s1539_s2 = inlined_call_operand.vmem [shape: f32[1,96], index: 2, kind: input, shape index: {}]   ;;  %s1540_s3 = inlined_call_operand.hbm [shape: f32[2,8,32], index: 3, kind: output, shape index: {0}]   ;;  %s1541_s4 = inlined_call_operand.hbm [shape: f32[2,8,32], index: 4, kind: output, shape index: {1}]   ;;  %s1542_s5 = inlined_call_operand.hbm [shape: f32[2,8,32], index: 5, kind: output, shape index: {2}]  }
   0x1   :  { %13 = vsyncpa [#allocation3 + $0x1], 0 }
   0x2   :  { %14 = vsyncpa [#allocation6], 0 }
   0x3   :  { %15 = vsyncpa [#allocation4], 0 }
   0x4   :  { %17 = vsyncpa [#allocation4 + $0x1], 0 }
   0x5   :  { %18 = vsyncpa [#allocation9], 0 }
   0x6   :  { %20 = vsyncpa [#allocation9 + $0x1], 0  ;;  %s1238_s18 = smov 0   ;;  %s1240_s19 = smov 0  }
   0x7   :  { %s1242_s20 = smov 0   ;;  %s1244_s21 = smov 0  }
   0x8   :  { %s1246_s22 = smov 0   ;;  %s1248_s23 = smov 0  }
   0x9 LB: > { %s1269_s24 = sadd.s32 4294967295, %s1194_s23   ;;  %s1546_s25 = sadd.s32 4294967294, %s1194_s23   ;;  %s1194_s23 = sphi %s1248_s23, %s26_s23   ;;  %s1190_s22 = sphi %s1246_s22, %s1566_s22   ;;  %s1186_s21 = sphi %s1244_s21, %s1565_s21   ;;  %s1182_s20 = sphi %s1242_s20, %s1564_s20   ;;  %s1178_s19 = sphi %s1240_s19, %s1563_s19   ;;  %s1174_s18 = sphi %s1238_s18, %s1562_s18  }
   0xa   : > { %p60_p0 = scmp.ne.s32.totalorder %s1178_s19, %s1174_s18  ;;  %p1543_p1 = scmp.eq.s32.totalorder %s1269_s24, 0 }
   0xb   : > { %p134_p3 = scmp.eq.s32.totalorder %s1546_s25, 1  ;;  %p789_p5 = scmp.ge.s32.totalorder %s1194_s23, 1 }
   0xc   : > { %p1280_p4 = por %p1543_p1, %p60_p0  ;;  %p197_p7 = scmp.lt.s32.totalorder %s1194_s23, 3 }
   0xd   : > { %p1285_p6 = por %p134_p3, %p60_p0  ;;  %s1196_s29 = smov [#allocation5]  }
   0xe   : > { %s1547_s26 = scalar_select %p1280_p4, 1, 0 }
   0xf   : > { %s1548_s27 = scalar_select %p1285_p6, 1, 0 }
  0x10   : > { %p1290_p8 = pnand %p789_p5, %p197_p7  ;;  %s209_s30 = sshll.u32 %s1196_s29, 4  ;;  %s210_s30 = int_to_ptr.vmem [resolvable:$true] %s209_s30 }
  0x11   : > { %s38_s7 = sadd.s32 1, %s1190_s22  ;;  %s990_s10 = scalar_lea.hbm %s1538_s1, 512 }
  0x12   : > { %s1549_s28 = scalar_select %p1290_p8, 1, 0 }
  0x13   : > { %p892_p9 = pneg %p1290_p8  ;;  %p991_p12 = scmp.ne.s32.totalorder %s1538_s1, %s990_s10 }
  0x14   : > { %p997_p5 = scmp.lt.u32.totalorder %s990_s10, %s1538_s1 }
  0x15   : > { %p1299_p11 = pnand %p892_p9, %p1543_p1 }
  0x17   : > { %p992_p13 = pneg %p1299_p11 }
  0x19   : > { %p993_p0 = pnand %p992_p13, %p991_p12 }
  0x1b   : > { %p994_p3 = pneg %p993_p0 }
  0x1d   : > { %p999_p7 = pnand %p997_p5, %p994_p3 }
  0x1f   : > { %1002 = shalt.err (!%p999_p7)
}
  0x20   : > { %s1003_s15 = scalar_lea.vmem %s210_s30, 512  ;;  %p1011_p2 = scmp.lt.s32.totalorder %s210_s30, %s210_s30 }
  0x21   : > { %p1004_p9 = scmp.ne.s32.totalorder %s210_s30, %s1003_s15  ;;  %p1012_p6 = scmp.lt.s32.totalorder %s1003_s15, %s1003_s15 }
  0x23   : > { %p1006_p10 = pnand %p1004_p9, %p992_p13  ;;  %p1013_p4 = por %p1012_p6, %p1011_p2 }
  0x25   : > { %p1007_p1 = pneg %p1006_p10 }
  0x27   : > { %p1014_p8 = pnand %p1013_p4, %p1007_p1 }
  0x29   : > { %1017 = shalt.err (!%p1014_p8)
}
  0x2a   : > { %s1197_s16 = smov 128   ;;  %s1198_s17 = smov 8  }
  0x2b   : > { %895 = dma.hbm_to_vmem [thread:$0]  (!%p1299_p11), %s1538_s1, 512, %s210_s30, [#allocation6], %s1197_s16, %s1197_s16, %s1198_s17  }
  0x2c   : > { %p40_p1 = scmp.ge.s32.totalorder %s38_s7, 2  ;;  %s47_s9 = sadd.s32 1, %s1182_s20 }
  0x2d   : > { %p54_p2 = scmp.ne.s32.totalorder %s1182_s20, %s1178_s19  ;;  %p55_p4 = scmp.eq.s32.totalorder %s1194_s23, 0 }
  0x2e   : > { %s1568_s7 = smov (%p40_p1, %s38_s7), 0  ;;  %p1552_p8 = scmp.eq.s32.totalorder %s1269_s24, 1 }
  0x2f   : > { %p1326_p6 = por %p55_p4, %p54_p2  ;;  %s42_s6 = ssub.s32 %s1190_s22, %s1568_s7 }
  0x30   : > { %p1332_p10 = por %p1552_p8, %p54_p2  ;;  %p911_p12 = scmp.lt.s32.totalorder %s1194_s23, 2 }
  0x31   : > { %p45_p11 = scmp.eq.s32.totalorder %s42_s6, 0  ;;  %s226_s30 = sand.u32 1, %s1182_s20  }
  0x32   : > { %s792_s12 = sshll.u32 %s226_s30, 3  ;;  %s793_s14 = sshll.u32 %s1190_s22, 7 }
  0x33   : > { %s1341_s13 = scalar_select %p45_p11, %s1182_s20, %s47_s9  }
  0x34   : > { %s1347_s17 = scalar_lea.hbm %s1537_s0, %s793_s14  ;;  %s230_s29 = scalar_lea.vmem [#allocation2], %s792_s12 }
  0x35   : > { %s238_s8 = sshll.u32 %s230_s29, 4  ;;  %p1353_p13 = pnand %p911_p12, %p1326_p6  ;;  %s1349_s8 = int_to_ptr.vmem [resolvable:$true] %s238_s8 }
  0x36   : > { %s227_s9 = scalar_lea.sflag [#allocation3], %s226_s30  ;;  %s1018_s25 = scalar_lea.hbm %s1347_s17, 128 }
  0x37   : > { %p1019_p0 = scmp.ne.s32.totalorder %s1347_s17, %s1018_s25  ;;  %p1020_p3 = pneg %p1353_p13 }
  0x38   : > { %s1023_s15 = scalar_lea.hbm %s1537_s0, 256  ;;  %p1024_p9 = scmp.lt.u32.totalorder %s1347_s17, %s1537_s0 }
  0x39   : > { %p1021_p5 = pnand %p1020_p3, %p1019_p0  ;;  %p1025_p1 = scmp.lt.u32.totalorder %s1023_s15, %s1018_s25 }
  0x3a   : > { %p1027_p4 = scmp.lt.u32.totalorder %s1018_s25, %s1347_s17 }
  0x3b   : > { %p1022_p7 = pneg %p1021_p5  ;;  %p1026_p2 = por %p1025_p1, %p1024_p9 }
  0x3d   : > { %p1028_p6 = por %p1027_p4, %p1026_p2 }
  0x3f   : > { %p1029_p8 = pnand %p1028_p6, %p1022_p7 }
  0x41   : > { %1032 = shalt.err (!%p1029_p8)
}
  0x42   : > { %s1033_s30 = scalar_lea.vmem %s1349_s8, 128  ;;  %s1199_s29 = smov [#allocation2]  }
  0x43   : > { %p1034_p12 = scmp.ne.s32.totalorder %s1349_s8, %s1033_s30  ;;  %s1038_s12 = sshll.u32 %s1199_s29, 4  ;;  %s1039_s12 = int_to_ptr.vmem [resolvable:$false] %s1038_s12 }
  0x44   : > { %s1040_s14 = scalar_lea.vmem %s1039_s12, 256  ;;  %p1041_p5 = scmp.lt.s32.totalorder %s1349_s8, %s1039_s12 }
  0x45   : > { %p1036_p11 = pnand %p1034_p12, %p1020_p3  ;;  %p1042_p9 = scmp.lt.s32.totalorder %s1040_s14, %s1033_s30 }
  0x47   : > { %p1037_p0 = pneg %p1036_p11  ;;  %p1043_p1 = por %p1042_p9, %p1041_p5 }
  0x49   : > { %p1044_p2 = pnand %p1043_p1, %p1037_p0 }
  0x4b   : > { %1047 = shalt.err (!%p1044_p2)
}
  0x4c   : > { %899 = dma.hbm_to_vmem [thread:$0]  (!%p1353_p13), %s1347_s17, 128, %s1349_s8, %s227_s9  }
  0x4d   : > { %p1555_p7 = scmp.ne.s32.totalorder %s1549_s28, 0 }
  0x4e   : > { %s1385_s25 = sand.u32 (!%p1555_p7), 1, %s1178_s19   ;;  %p1556_p3 = scmp.ne.s32.totalorder (!%p1555_p7), %s1547_s26, 0 }
  0x4f   : > { %247 = sbr.rel (%p1555_p7) target bundleno = 471 (0x1d7), region = 32  ;;  %s1388_s15 = sshll.u32 (!%p1555_p7), %s1385_s25, 3 }
  0x50   : > { %s250_s10 = scalar_lea.sflag (!%p1555_p7), [#allocation3], %s1385_s25  ;;  %s253_s16 = scalar_lea.vmem (!%p1555_p7), [#allocation2], %s1388_s15 }
  0x56   : > { %1157 = dma.done.wait (%p1556_p3), %s250_s10, 128  }
  0x57   : > { %1159 = vsyncadd (%p1556_p3), %s250_s10, 4294967168  ;;  %p1557_p13 = scmp.eq.s32.totalorder %s1269_s24, 0 }
  0x59   : > { %1161 = dma.done.wait (%p1557_p13), [#allocation6], 512   ;;  %p1558_p4 = pmov %p1557_p13 }
  0x5a   : > { %v1200_v0 = vmov 0.0|0.0   ;;  %vm1201_vm0 = vmmov 0   ;;  %v1202_v1 = vmov 0.0   ;;  %v381_v2 = vld [vmem:[#allocation5] sm:$0xff]  ;;  %v382_v3 = vld [vmem:[#allocation5 + $0x8] sm:$0xff]  ;;  %v383_v4 = vld [vmem:[#allocation5 + $0x10] sm:$0xff] }
  0x5b   : > { %1163 = vsyncadd (%p1558_p4), [#allocation6], 4294966784  ;;  %862 = vmatprep.subr.bf16.mxu0 %v1200_v0  ;;  %868 = vmatprep.subr.bf16.mxu1 %v1200_v0  ;;  %v970_v5 = vpack.i.bf16 %v382_v3, %v381_v2  ;;  %v384_v6 = vld [vmem:[#allocation5 + $0x18] sm:$0xff]  ;;  %v863_v7 = vpack.c.bf16 %v382_v3, %v381_v2  ;;  %s1203_s26 = smov 96   ;;  %s1204_s28 = smov 64   ;;  %vm306_vm1 = vcmask 261120  }
  0x5c   : > { %837 = vmatprep.mubr.msk.f32.mxu0 %vm1201_vm0, %v1202_v1  ;;  %848 = vmatprep.mubr.msk.f32.mxu1 %vm1201_vm0, %v1202_v1  ;;  %v980_v8 = vpack.i.bf16 %v384_v6, %v383_v4  ;;  %v866_v9 = vpack.c.bf16 %v384_v6, %v383_v4  ;;  %v294_v10 = vld [vmem:[%s253_s16] sm:$0xff]  ;;  %s1410_s6 = sshll.u32 %s1186_s21, 7  ;;  %s279_s9 = scalar_lea.vmem [#allocation7], %s1388_s15 }
  0x5d   : > { %971 = vrot.lane.b32.xlu0 %v970_v5, %s1203_s26  ;;  %864 = vmatpush3.bf16.msra.mxu0 %v863_v7  ;;  %v802_v11 = vld [vmem:[%s1539_s2] ss:$0 sm:$0xff]  ;;  %s606_s30 = sshll.u32 %s279_s9, 4  ;;  %s1417_s14 = scalar_lea.hbm %s1540_s3, %s1410_s6  ;;  %s1419_s30 = int_to_ptr.vmem [resolvable:$true] %s606_s30 }
  0x5e   : > { %981 = vrot.lane.b32.xlu1 %v980_v8, %s1203_s26  ;;  %865 = vmatprep.subr.bf16.mxu0 %v1200_v0  ;;  %s582_s21 = scalar_lea.sflag [#allocation4], %s1385_s25  ;;  %s1048_s10 = scalar_lea.vmem %s1419_s30, 128 }
  0x5f   : > { %p1049_p6 = scmp.ne.s32.totalorder %s1419_s30, %s1048_s10  ;;  %s1205_s16 = smov [#allocation7]  }
  0x61   : > { %976 = vrot.lane.b32.xlu0 %v970_v5, %s1204_s28  ;;  %867 = vmatpush3.bf16.msra.mxu0 %v866_v9  ;;  %p1050_p8 = pnand %p1049_p6, %p1332_p10 }
  0x62   : > { %986 = vrot.lane.b32.xlu1 %v980_v8, %s1204_s28  ;;  %874 = vmatprep.subr.bf16.mxu0 %v1200_v0 }
  0x63   : > { %p1051_p12 = pneg %p1050_p8 }
  0x64   : > { %838 = vmatmul.mubr.msk.f32.vlgmr.msra.gmra.mrb[0].mxu0 %vm306_vm1, %v294_v10 }
  0x65   : > { %859 = vmatprep.mubr.msk.f32.mxu0 %vm1201_vm0, %v1202_v1  ;;  %407 = vrot.lane.b32.xlu0 %v802_v11, %s1203_s26  ;;  %s1052_s26 = sshll.u32 %s1205_s16, 4  ;;  %s1053_s26 = int_to_ptr.vmem [resolvable:$false] %s1052_s26 }
  0x66   : > { %507 = vrot.lane.b32.xlu1 %v802_v11, %s1204_s28  ;;  %s1054_s28 = scalar_lea.vmem %s1053_s26, 256  ;;  %p1055_p11 = scmp.lt.s32.totalorder %s1419_s30, %s1053_s26 }
  0x67   : > { %p1056_p0 = scmp.lt.s32.totalorder %s1054_s28, %s1048_s10 }
  0x69   : > { %p1057_p5 = por %p1056_p0, %p1055_p11 }
  0x6b   : > { %p1058_p9 = pnand %p1057_p5, %p1051_p12 }
  0xcf   : > { %v972_v12 = vpop.permute.xlu0 %971 }
  0xd0   : > { %v974_v13 = vunpack.i.h.bf16 %v972_v12  ;;  %v973_v14 = vunpack.i.l.bf16 %v972_v12  ;;  %v982_v15 = vpop.permute.xlu1 %981 }
  0xd1   : > { %v984_v16 = vunpack.i.h.bf16 %v982_v15  ;;  %v983_v17 = vunpack.i.l.bf16 %v982_v15 }
  0xd2   : > { %v869_v18 = vpack.c.bf16 %v974_v13, %v973_v14 }
  0xd3   : > { %v977_v19 = vpop.permute.xlu0 %976  ;;  %v872_v20 = vpack.c.bf16 %v984_v16, %v983_v17 }
  0xd4   : > { %v979_v21 = vunpack.i.h.bf16 %v977_v19  ;;  %v978_v22 = vunpack.i.l.bf16 %v977_v19  ;;  %870 = vmatpush3.bf16.msra.mxu1 %v869_v18  ;;  %v987_v23 = vpop.permute.xlu1 %986 }
  0xd5   : > { %v989_v24 = vunpack.i.h.bf16 %v987_v23  ;;  %v988_v25 = vunpack.i.l.bf16 %v987_v23  ;;  %871 = vmatprep.subr.bf16.mxu1 %v1200_v0 }
  0xd6   : > { %v875_v26 = vpack.c.bf16 %v979_v21, %v978_v22 }
  0xd7   : > { %v878_v27 = vpack.c.bf16 %v989_v24, %v988_v25 }
  0xd8   : > { %873 = vmatpush3.bf16.msra.mxu1 %v872_v20  ;;  %876 = vmatpush3.bf16.msra.mxu0 %v875_v26 }
  0xd9   : > { %877 = vmatprep.subr.bf16.mxu0 %v1200_v0 }
  0xdb   : > { %849 = vmatmul.mubr.msk.f32.vlgmr.msra.gmra.mrb[0].mxu1 %vm306_vm1, %v294_v10 }
  0xdc   : > { %879 = vmatpush3.bf16.msra.mxu0 %v878_v27 }
  0xdf   : > { %860 = vmatmul.mubr.msk.f32.vlgmr.msra.gmra.mrb[2].mxu0 %vm306_vm1, %v294_v10 }
 0x137   : > { %v376_v28 = vpop.f32.mrb[0].mxu0 }
 0x138   : > { %v377_v29 = vadd.f32 %v802_v11, %v376_v28  ;;  %v839_v30 = vpop.f32.mrb[1].mxu0 }
 0x13a   : > { %380 = vst.msk [vmem:[%s279_s9] sm:$0xff] %vm306_vm1, %v377_v29 }
 0x13b   : > { %1061 = shalt.err (!%p1058_p9)
}
 0x13c   : > { %s1062_s25 = scalar_lea.hbm %s1417_s14, 128  ;;  %s1066_s9 = scalar_lea.hbm %s1540_s3, 256 }
 0x13d   : > { %p1063_p1 = scmp.ne.s32.totalorder %s1417_s14, %s1062_s25  ;;  %p1067_p3 = scmp.lt.u32.totalorder %s1417_s14, %s1540_s3 }
 0x13e   : > { %p1068_p13 = scmp.lt.u32.totalorder %s1066_s9, %s1062_s25  ;;  %p1070_p6 = scmp.lt.u32.totalorder %s1062_s25, %s1417_s14 }
 0x13f   : > { %p1064_p2 = pnand %p1063_p1, %p1332_p10 }
 0x140   : > { %p1069_p4 = por %p1068_p13, %p1067_p3 }
 0x141   : > { %p1065_p7 = pneg %p1064_p2 }
 0x142   : > { %p1071_p8 = por %p1070_p6, %p1069_p4 }
 0x144   : > { %p1072_p12 = pnand %p1071_p8, %p1065_p7 }
 0x146   : > { %1075 = shalt.err (!%p1072_p12)
}
 0x147   : > { %886 = dma.vmem_to_hbm [thread:$0]  (%p1332_p10), %s1419_s30, 128, %s1417_s14, %s582_s21   ;;  %v408_v31 = vpop.permute.xlu0 %407  ;;  %v508_v35 = vpop.permute.xlu1 %507 }
 0x148   : > { %s586_s10 = sand.u32 1, %s1269_s24   ;;  %s286_s16 = scalar_lea.vmem [#allocation8], %s1388_s15 }
 0x149   : > { %s620_s26 = sshll.u32 %s286_s16, 4  ;;  %s1450_s17 = scalar_lea.hbm %s1541_s4, %s1410_s6  ;;  %s1452_s26 = int_to_ptr.vmem [resolvable:$true] %s620_s26 }
 0x14a   : > { %s293_s30 = scalar_lea.vmem [#allocation10], %s1388_s15  ;;  %s1460_s14 = scalar_lea.sflag [#allocation9], %s586_s10 }
 0x14b   : > { %s1457_s24 = sshll.u32 %s293_s30, 4  ;;  %s1076_s21 = scalar_lea.vmem %s1452_s26, 128  ;;  %s635_s24 = int_to_ptr.vmem [resolvable:$true] %s1457_s24 }
 0x14c   : > { %p1077_p11 = scmp.ne.s32.totalorder %s1452_s26, %s1076_s21  ;;  %s1206_s8 = smov [#allocation8]  }
 0x14d   : > { %s1080_s9 = sshll.u32 %s1206_s8, 4  ;;  %s1081_s9 = int_to_ptr.vmem [resolvable:$false] %s1080_s9 }
 0x14e   : > { %p1078_p0 = pnand %p1077_p11, %p1332_p10  ;;  %s1082_s29 = scalar_lea.vmem %s1081_s9, 256 }
 0x14f   : > { %p1083_p9 = scmp.lt.s32.totalorder %s1452_s26, %s1081_s9  ;;  %p1084_p1 = scmp.lt.s32.totalorder %s1082_s29, %s1076_s21 }
 0x150   : > { %p1079_p5 = pneg %p1078_p0 }
 0x151   : > { %p1085_p2 = por %p1084_p1, %p1083_p9 }
 0x153   : > { %p1086_p7 = pnand %p1085_p2, %p1079_p5 }
 0x1ae   : > { %v476_v32 = vpop.f32.mrb[0].mxu1 }
 0x1af   : > { %v477_v33 = vadd.f32 %v476_v32, %v408_v31  ;;  %v850_v34 = vpop.f32.mrb[1].mxu1 }
 0x1b1   : > { %480 = vst.msk [vmem:[%s286_s16] sm:$0xff] %vm306_vm1, %v477_v33 }
 0x1b2   : > { %v576_v36 = vpop.f32.mrb[2].mxu0 }
 0x1b3   : > { %1089 = shalt.err (!%p1086_p7)
}
 0x1b4   : > { %s1090_s12 = scalar_lea.hbm %s1450_s17, 128  ;;  %s1094_s28 = scalar_lea.hbm %s1541_s4, 256 }
 0x1b5   : > { %p1091_p3 = scmp.ne.s32.totalorder %s1450_s17, %s1090_s12  ;;  %p1095_p6 = scmp.lt.u32.totalorder %s1450_s17, %s1541_s4 }
 0x1b6   : > { %p1096_p8 = scmp.lt.u32.totalorder %s1094_s28, %s1090_s12  ;;  %p1098_p11 = scmp.lt.u32.totalorder %s1090_s12, %s1450_s17 }
 0x1b7   : > { %p1092_p13 = pnand %p1091_p3, %p1332_p10 }
 0x1b8   : > { %p1097_p12 = por %p1096_p8, %p1095_p6 }
 0x1b9   : > { %p1093_p4 = pneg %p1092_p13 }
 0x1ba   : > { %p1099_p0 = por %p1098_p11, %p1097_p12 }
 0x1bc   : > { %p1100_p5 = pnand %p1099_p0, %p1093_p4 }
 0x1be   : > { %1103 = shalt.err (!%p1100_p5)
}
 0x1bf   : > { %887 = dma.vmem_to_hbm [thread:$0]  (%p1332_p10), %s1452_s26, 128, %s1450_s17, %s1460_s14   ;;  %v577_v37 = vadd.f32 %v576_v36, %v508_v35  ;;  %v861_v38 = vpop.f32.mrb[3].mxu0 }
 0x1c0   : > { %s1488_s29 = scalar_lea.hbm %s1542_s5, %s1410_s6  ;;  %s1104_s12 = scalar_lea.vmem %s635_s24, 128 }
 0x1c1   : > { %580 = vst.msk [vmem:[%s293_s30] sm:$0xff] %vm306_vm1, %v577_v37  ;;  %p1105_p9 = scmp.ne.s32.totalorder %s635_s24, %s1104_s12  ;;  %s1207_s10 = smov [#allocation10]  }
 0x1c2   : > { %s1108_s16 = sshll.u32 %s1207_s10, 4  ;;  %s1109_s16 = int_to_ptr.vmem [resolvable:$false] %s1108_s16 }
 0x1c3   : > { %p1106_p1 = pnand %p1105_p9, %p1332_p10  ;;  %s1110_s26 = scalar_lea.vmem %s1109_s16, 256 }
 0x1c4   : > { %p1111_p7 = scmp.lt.s32.totalorder %s635_s24, %s1109_s16  ;;  %p1112_p3 = scmp.lt.s32.totalorder %s1110_s26, %s1104_s12 }
 0x1c5   : > { %p1107_p2 = pneg %p1106_p1 }
 0x1c6   : > { %p1113_p13 = por %p1112_p3, %p1111_p7 }
 0x1c8   : > { %p1114_p4 = pnand %p1113_p13, %p1107_p2 }
 0x1ca   : > { %1117 = shalt.err (!%p1114_p4)
}
 0x1cb   : > { %s1118_s15 = scalar_lea.hbm %s1488_s29, 128  ;;  %s1122_s30 = scalar_lea.hbm %s1542_s5, 256 }
 0x1cc   : > { %p1119_p6 = scmp.ne.s32.totalorder %s1488_s29, %s1118_s15  ;;  %p1123_p11 = scmp.lt.u32.totalorder %s1488_s29, %s1542_s5 }
 0x1cd   : > { %p1124_p0 = scmp.lt.u32.totalorder %s1122_s30, %s1118_s15  ;;  %p1126_p9 = scmp.lt.u32.totalorder %s1118_s15, %s1488_s29 }
 0x1ce   : > { %p1120_p8 = pnand %p1119_p6, %p1332_p10 }
 0x1cf   : > { %p1125_p5 = por %p1124_p0, %p1123_p11 }
 0x1d0   : > { %p1121_p12 = pneg %p1120_p8 }
 0x1d1   : > { %p1127_p1 = por %p1126_p9, %p1125_p5 }
 0x1d3   : > { %p1128_p2 = pnand %p1127_p1, %p1121_p12 }
 0x1d5   : > { %1131 = shalt.err (!%p1128_p2)
}
 0x1d6   : > { %888 = dma.vmem_to_hbm [thread:$0]  (%p1332_p10), %s635_s24, 128, %s1488_s29, %s1460_s14  }
 0x1d7 PF: > { %s646_s8 = sand.u32 1, %s1174_s18   ;;  %p1559_p7 = scmp.ne.s32.totalorder %s1548_s27, 0 }
 0x1d8   : > { %p1560_p3 = scmp.ge.s32.totalorder %s1194_s23, 2  ;;  %s647_s21 = scalar_lea.sflag [#allocation4], %s646_s8 }
 0x1da   : > { %p901_p13 = pnand %p1560_p3, %p1559_p7 }
 0x1dc   : > { %1165 = dma.done.wait (!%p901_p13), %s647_s21, 128  }
 0x1dd   : > { %1167 = vsyncadd (!%p901_p13), %s647_s21, 4294967168  ;;  %s1561_s9 = sadd.s32 4294967294, %s1194_s23  }
 0x1de   : > { %s655_s12 = sand.u32 1, %s1561_s9  }
 0x1df   : > { %s656_s10 = scalar_lea.sflag [#allocation9], %s655_s12 }
 0x1e0   : > { %1169 = dma.done.wait (!%p901_p13), %s656_s10, 256  }
 0x1e1   : > { %1171 = vsyncadd (!%p901_p13), %s656_s10, 4294967040  ;;  %s26_s23 = sadd.s32 1, %s1194_s23   ;;  %s1562_s18 = smov %s1178_s19 }
 0x1e2   : > { %p23_p10 = scmp.ge.s32.totalorder %s26_s23, 4   ;;  %s1563_s19 = smov %s1182_s20 }
 0x1e3   : > { %s1564_s20 = smov %s1341_s13  ;;  %s1565_s21 = smov %s1190_s22 }
 0x1e4   : > { %s1566_s22 = smov %s1568_s7  ;;  %25 = sbr.rel (!%p23_p10) target bundleno = 9 (0x9), region = 113 }
 0x1eb   :  { %670 = vsyncpa [#allocation3], 1 }
 0x1ec   :  { %672 = vsyncpa [#allocation3 + $0x1], 1 }
 0x1ed   :  { %673 = vsyncpa [#allocation6], 1 }
 0x1ee   :  { %674 = vsyncpa [#allocation4], 1 }
 0x1ef   :  { %676 = vsyncpa [#allocation4 + $0x1], 1 }
 0x1f0   :  { %677 = vsyncpa [#allocation9], 1 }
 0x1f1   :  { %679 = vsyncpa [#allocation9 + $0x1], 1 }

</bundles_post_ra>
